<compile_context>
chip_gen: v5e
topology: v5e:2x2
jax: 0.10.0
libtpu: 0.0.40
codegen_flags: <defaults>
</compile_context>

<pallas_src>
import jax
import jax.numpy as jnp
from jax.experimental import pallas as pl
from jax.experimental.pallas import tpu as pltpu


def _neg_log_sigmoid(z):
    # -log(sigmoid(z)) = softplus(-z), numerically stable form.
    return jnp.maximum(-z, 0.0) + jnp.log(1.0 + jnp.exp(-jnp.abs(z)))


def _cbow_loss_kernel(c_ref, lens_ref, valid_ref, wn_ref, sm_ref, out_ref):
    # Per batch tile (batch mapped to the LANE axis):
    #   c_ref:     (2W, D, Bt)   context embeddings (emb0 gather), f32/bf16
    #   lens_ref:  (1, Bt) f32   number of real context words per row
    #   valid_ref: (1, Bt) f32   1.0 for real batch rows, 0.0 for lane padding
    #   wn_ref:    (N+1, D, Bt)  [target ; negatives] embeddings (emb1 gather)
    #   sm_ref:    (N+1, Bt) f32 signed mask: row 0 = +1, rows 1..N = -neg_mask
    #   out_ref:   (1, Bt) f32   lane-dense per-row partial loss
    f32 = jnp.float32
    n_ctx = c_ref.shape[0]

    # CBOWMean: sum over context slots (unrolled adds over the leading dim,
    # pure VALU work), then one reciprocal per row on the EUP.
    ctx_sum = c_ref[0].astype(f32)                      # (D, Bt)
    for k in range(1, n_ctx):
        ctx_sum = ctx_sum + c_ref[k].astype(f32)
    inv_lens = pl.reciprocal(lens_ref[...], approx=True)  # (1, Bt)
    c_mean = ctx_sum * inv_lens                            # (D, Bt)

    # Fused positive + negative inner products: one multiply, one sublane
    # reduction over D for all (N+1) rows at once.
    wn = wn_ref[...].astype(f32)                           # (N+1, D, Bt)
    ips = jnp.sum(wn * c_mean[None, :, :], axis=1)         # (N+1, Bt)

    # Signed mask folds the pos/neg sign flip and the negative-sample mask
    # into a single multiply; masked negatives give softplus(0) = log(2),
    # matching the reference semantics (mask applied to the logits).
    z = ips * sm_ref[...]                                  # (N+1, Bt)
    loss = _neg_log_sigmoid(z)                             # (N+1, Bt)

    # Lane-dense partial output; padded lanes are zeroed via `valid`.
    out_ref[...] = jnp.sum(loss, axis=0, keepdims=True) * valid_ref[...]


def cbow_forward(data, emb0, emb1, window, negative, *,
                 batch_tile=128, emb_compute_dtype=None):
    B = data.shape[0]
    W2 = 2 * window
    D = emb0.shape[1]
    N = negative

    ctx_indices = data[:, 0:W2]                              # (B, 2W)
    ctx_lens = data[:, W2].astype(jnp.float32)               # (B,)
    word_idx = data[:, W2 + 1]                               # (B,)
    neg_indices = data[:, W2 + 2:W2 + 2 + N]                 # (B, N)
    neg_mask = data[:, W2 + 2 + N:].astype(jnp.float32)      # (B, N)

    if emb_compute_dtype is not None:
        emb0 = emb0.astype(emb_compute_dtype)
        emb1 = emb1.astype(emb_compute_dtype)

    # Embedding gathers (data-dependent indexing stays in XLA for now).
    wn_indices = jnp.concatenate([word_idx[:, None], neg_indices], axis=1)
    c_embs = emb0[ctx_indices]                               # (B, 2W, D)
    wn_embs = emb1[wn_indices]                               # (B, N+1, D)

    # Signed mask: +1 for the positive column, -mask for the negatives.
    sm = jnp.concatenate([jnp.ones((B, 1), jnp.float32), -neg_mask], axis=1)

    # Lane-dense layout: batch -> last (lane) axis; pad B to the batch tile.
    Bt = int(batch_tile)
    Bp = ((B + Bt - 1) // Bt) * Bt
    pad = Bp - B

    c_t = jnp.transpose(c_embs, (1, 2, 0))                   # (2W, D, B)
    wn_t = jnp.transpose(wn_embs, (1, 2, 0))                 # (N+1, D, B)
    sm_t = sm.T                                              # (N+1, B)
    lens_t = ctx_lens[None, :]                               # (1, B)
    valid_t = jnp.ones((1, B), jnp.float32)

    if pad:
        c_t = jnp.pad(c_t, ((0, 0), (0, 0), (0, pad)))
        wn_t = jnp.pad(wn_t, ((0, 0), (0, 0), (0, pad)))
        sm_t = jnp.pad(sm_t, ((0, 0), (0, pad)))
        lens_t = jnp.pad(lens_t, ((0, 0), (0, pad)), constant_values=1.0)
        valid_t = jnp.pad(valid_t, ((0, 0), (0, pad)))

    num_blocks = Bp // Bt

    partials = pl.pallas_call(
        _cbow_loss_kernel,
        out_shape=jax.ShapeDtypeStruct((1, Bp), jnp.float32),
        grid=(num_blocks,),
        in_specs=[
            pl.BlockSpec((W2, D, Bt), lambda i: (0, 0, i)),
            pl.BlockSpec((1, Bt), lambda i: (0, i)),
            pl.BlockSpec((1, Bt), lambda i: (0, i)),
            pl.BlockSpec((N + 1, D, Bt), lambda i: (0, 0, i)),
            pl.BlockSpec((N + 1, Bt), lambda i: (0, i)),
        ],
        out_specs=pl.BlockSpec((1, Bt), lambda i: (0, i)),
        compiler_params=pltpu.CompilerParams(
            dimension_semantics=("parallel",),
        ),
    )(c_t, lens_t, valid_t, wn_t, sm_t)

    # Tiny final reduction (num_blocks x 128 lane partials) in JAX.
    return jnp.sum(partials)


def cbow_forward_ref(data, emb0, emb1, window, negative):
    # Pure-JAX reference mirroring the PyTorch forward.
    W2 = 2 * window
    N = negative
    ctx_indices = data[:, 0:W2]
    ctx_lens = data[:, W2].astype(jnp.float32)
    word_idx = data[:, W2 + 1]
    neg_indices = data[:, W2 + 2:W2 + 2 + N]
    neg_mask = data[:, W2 + 2 + N:].astype(jnp.float32)

    c_embs = emb0[ctx_indices]
    w_embs = emb1[word_idx]
    n_embs = emb1[neg_indices]

    c_mean = jnp.sum(c_embs, axis=1) / ctx_lens[:, None]          # (B, D)
    pos_ips = jnp.sum(c_mean * w_embs, axis=1)                     # (B,)
    neg_ips = jnp.sum(n_embs * c_mean[:, None, :], axis=2) * neg_mask
    pos_loss = jnp.sum(-jax.nn.log_sigmoid(pos_ips))
    neg_loss = jnp.sum(-jax.nn.log_sigmoid(-neg_ips))
    return pos_loss + neg_loss


if __name__ == "__main__":
    # Small synthetic config consistent with the module.
    vocab_size = 50
    size = 32          # embedding dim D
    window = 4         # 2*window = 8 context slots
    negative = 5
    B = 200            # exercises a 2-block grid (tile=128) + lane padding
    pad_idx = vocab_size

    key = jax.random.PRNGKey(0)
    k_e0, k_e1, k_ctx, k_len, k_w, k_neg, k_mask = jax.random.split(key, 7)

    # Deterministic parameter init (matches nn.Embedding init in __init__).
    bound = 0.5 / size
    emb0 = jax.random.uniform(k_e0, (vocab_size + 1, size), jnp.float32,
                              minval=-bound, maxval=bound)
    emb0 = emb0.at[pad_idx].set(0.0)                  # padding row zeroed
    emb1 = jax.random.uniform(k_e1, (vocab_size, size), jnp.float32,
                              minval=-bound, maxval=bound)

    # Deterministic synthetic training batch.
    W2 = 2 * window
    lens = jax.random.randint(k_len, (B,), 1, W2 + 1)             # in [1, 2W]
    ctx = jax.random.randint(k_ctx, (B, W2), 0, vocab_size)
    pos = jnp.arange(W2)[None, :]
    ctx = jnp.where(pos < lens[:, None], ctx, pad_idx)            # pad the tail
    word_idx = jax.random.randint(k_w, (B,), 0, vocab_size)
    neg_idx = jax.random.randint(k_neg, (B, negative), 0, vocab_size)
    neg_mask = jax.random.bernoulli(k_mask, 0.8, (B, negative)).astype(jnp.int32)

    data = jnp.concatenate(
        [ctx, lens[:, None], word_idx[:, None], neg_idx, neg_mask],
        axis=1).astype(jnp.int32)                                  # (B, 20)

    # f32 path (exact module semantics).
    loss = jax.block_until_ready(cbow_forward(data, emb0, emb1, window, negative))
    ref = cbow_forward_ref(data, emb0, emb1, window, negative)
    assert jnp.allclose(loss, ref, rtol=1e-4, atol=1e-3), (loss, ref)

    # bf16 embedding tables (halves HBM traffic of the dominant gathered
    # tensors; kernel casts to f32 on load so v5e stays on the f32 path).
    loss_bf16 = jax.block_until_ready(
        cbow_forward(data, emb0, emb1, window, negative,
                     emb_compute_dtype=jnp.bfloat16))
    assert jnp.allclose(loss_bf16, ref, rtol=1e-2, atol=1e-1), (loss_bf16, ref)

    print("KERNEL_OK")
</pallas_src>

<mosaic_0001>
module attributes {stable_mosaic.version = 11 : i64} {
  func.func @_cbow_loss_kernel(%arg0: i32, %arg1: memref<8x32x128xf32, #tpu.memory_space<vmem>>, %arg2: memref<1x128xf32, #tpu.memory_space<vmem>>, %arg3: memref<1x128xf32, #tpu.memory_space<vmem>>, %arg4: memref<6x32x128xf32, #tpu.memory_space<vmem>>, %arg5: memref<6x128xf32, #tpu.memory_space<vmem>>, %arg6: memref<1x128xf32, #tpu.memory_space<vmem>>) attributes {dimension_semantics = [#tpu.dimension_semantics<parallel>], iteration_bounds = array<i64: 2>, scalar_prefetch = 0 : i64, scratch_operands = 0 : i64, tpu.core_type = #tpu.core_type<tc>, window_params = [{transform_indices = @transform_0, window_bounds = array<i64: 8, 32, 128>}, {transform_indices = @transform_1, window_bounds = array<i64: 1, 128>}, {transform_indices = @transform_2, window_bounds = array<i64: 1, 128>}, {transform_indices = @transform_3, window_bounds = array<i64: 6, 32, 128>}, {transform_indices = @transform_4, window_bounds = array<i64: 6, 128>}, {transform_indices = @transform_5, window_bounds = array<i64: 1, 128>}]} {
    %c0 = arith.constant 0 : index
    %c0_0 = arith.constant 0 : index
    %c0_1 = arith.constant 0 : index
    %0 = vector.load %arg1[%c0, %c0_0, %c0_1] : memref<8x32x128xf32, #tpu.memory_space<vmem>>, vector<1x32x128xf32>
    %1 = vector.shape_cast %0 : vector<1x32x128xf32> to vector<32x128xf32>
    %c1 = arith.constant 1 : index
    %c0_2 = arith.constant 0 : index
    %c0_3 = arith.constant 0 : index
    %2 = vector.load %arg1[%c1, %c0_2, %c0_3] : memref<8x32x128xf32, #tpu.memory_space<vmem>>, vector<1x32x128xf32>
    %3 = vector.shape_cast %2 : vector<1x32x128xf32> to vector<32x128xf32>
    %4 = arith.addf %1, %3 : vector<32x128xf32>
    %c2 = arith.constant 2 : index
    %c0_4 = arith.constant 0 : index
    %c0_5 = arith.constant 0 : index
    %5 = vector.load %arg1[%c2, %c0_4, %c0_5] : memref<8x32x128xf32, #tpu.memory_space<vmem>>, vector<1x32x128xf32>
    %6 = vector.shape_cast %5 : vector<1x32x128xf32> to vector<32x128xf32>
    %7 = arith.addf %4, %6 : vector<32x128xf32>
    %c3 = arith.constant 3 : index
    %c0_6 = arith.constant 0 : index
    %c0_7 = arith.constant 0 : index
    %8 = vector.load %arg1[%c3, %c0_6, %c0_7] : memref<8x32x128xf32, #tpu.memory_space<vmem>>, vector<1x32x128xf32>
    %9 = vector.shape_cast %8 : vector<1x32x128xf32> to vector<32x128xf32>
    %10 = arith.addf %7, %9 : vector<32x128xf32>
    %c4 = arith.constant 4 : index
    %c0_8 = arith.constant 0 : index
    %c0_9 = arith.constant 0 : index
    %11 = vector.load %arg1[%c4, %c0_8, %c0_9] : memref<8x32x128xf32, #tpu.memory_space<vmem>>, vector<1x32x128xf32>
    %12 = vector.shape_cast %11 : vector<1x32x128xf32> to vector<32x128xf32>
    %13 = arith.addf %10, %12 : vector<32x128xf32>
    %c5 = arith.constant 5 : index
    %c0_10 = arith.constant 0 : index
    %c0_11 = arith.constant 0 : index
    %14 = vector.load %arg1[%c5, %c0_10, %c0_11] : memref<8x32x128xf32, #tpu.memory_space<vmem>>, vector<1x32x128xf32>
    %15 = vector.shape_cast %14 : vector<1x32x128xf32> to vector<32x128xf32>
    %16 = arith.addf %13, %15 : vector<32x128xf32>
    %c6 = arith.constant 6 : index
    %c0_12 = arith.constant 0 : index
    %c0_13 = arith.constant 0 : index
    %17 = vector.load %arg1[%c6, %c0_12, %c0_13] : memref<8x32x128xf32, #tpu.memory_space<vmem>>, vector<1x32x128xf32>
    %18 = vector.shape_cast %17 : vector<1x32x128xf32> to vector<32x128xf32>
    %19 = arith.addf %16, %18 : vector<32x128xf32>
    %c7 = arith.constant 7 : index
    %c0_14 = arith.constant 0 : index
    %c0_15 = arith.constant 0 : index
    %20 = vector.load %arg1[%c7, %c0_14, %c0_15] : memref<8x32x128xf32, #tpu.memory_space<vmem>>, vector<1x32x128xf32>
    %21 = vector.shape_cast %20 : vector<1x32x128xf32> to vector<32x128xf32>
    %22 = arith.addf %19, %21 : vector<32x128xf32>
    %c0_16 = arith.constant 0 : index
    %c0_17 = arith.constant 0 : index
    %23 = vector.load %arg2[%c0_16, %c0_17] : memref<1x128xf32, #tpu.memory_space<vmem>>, vector<1x128xf32>
    %24 = tpu.reciprocal %23 {approx = true} : vector<1x128xf32> -> vector<1x128xf32>
    %25 = vector.broadcast %24 : vector<1x128xf32> to vector<32x128xf32>
    %26 = arith.mulf %22, %25 : vector<32x128xf32>
    %c0_18 = arith.constant 0 : index
    %c0_19 = arith.constant 0 : index
    %c0_20 = arith.constant 0 : index
    %27 = vector.load %arg4[%c0_18, %c0_19, %c0_20] : memref<6x32x128xf32, #tpu.memory_space<vmem>>, vector<6x32x128xf32>
    %28 = vector.shape_cast %26 : vector<32x128xf32> to vector<1x32x128xf32>
    %29 = vector.broadcast %28 : vector<1x32x128xf32> to vector<6x32x128xf32>
    %30 = arith.mulf %27, %29 : vector<6x32x128xf32>
    %cst = arith.constant dense<0.000000e+00> : vector<6x128xf32>
    %31 = vector.multi_reduction <add>, %30, %cst [1] : vector<6x32x128xf32> to vector<6x128xf32>
    %c0_21 = arith.constant 0 : index
    %c0_22 = arith.constant 0 : index
    %32 = vector.load %arg5[%c0_21, %c0_22] : memref<6x128xf32, #tpu.memory_space<vmem>>, vector<6x128xf32>
    %33 = arith.mulf %31, %32 : vector<6x128xf32>
    %cst_23 = arith.constant 0.000000e+00 : f32
    %34 = vector.broadcast %cst_23 : f32 to vector<6x128xf32>
    %35 = arith.subf %34, %33 : vector<6x128xf32>
    %cst_24 = arith.constant 0.000000e+00 : f32
    %36 = vector.broadcast %cst_24 : f32 to vector<6x128xf32>
    %37 = arith.maximumf %35, %36 : vector<6x128xf32>
    %38 = math.absf %33 : vector<6x128xf32>
    %cst_25 = arith.constant 0.000000e+00 : f32
    %39 = vector.broadcast %cst_25 : f32 to vector<6x128xf32>
    %40 = arith.subf %39, %38 : vector<6x128xf32>
    %41 = math.exp %40 : vector<6x128xf32>
    %cst_26 = arith.constant 1.000000e+00 : f32
    %42 = vector.broadcast %cst_26 : f32 to vector<6x128xf32>
    %43 = arith.addf %42, %41 : vector<6x128xf32>
    %44 = math.log %43 : vector<6x128xf32>
    %45 = arith.addf %37, %44 : vector<6x128xf32>
    %cst_27 = arith.constant dense<0.000000e+00> : vector<128xf32>
    %46 = vector.multi_reduction <add>, %45, %cst_27 [0] : vector<6x128xf32> to vector<128xf32>
    %47 = vector.shape_cast %46 : vector<128xf32> to vector<1x128xf32>
    %c0_28 = arith.constant 0 : index
    %c0_29 = arith.constant 0 : index
    %48 = vector.load %arg3[%c0_28, %c0_29] : memref<1x128xf32, #tpu.memory_space<vmem>>, vector<1x128xf32>
    %49 = arith.mulf %47, %48 : vector<1x128xf32>
    %c0_30 = arith.constant 0 : index
    %c0_31 = arith.constant 0 : index
    %50 = vector.load %arg6[%c0_30, %c0_31] : memref<1x128xf32, #tpu.memory_space<vmem>>, vector<1x128xf32>
    tpu.vector_store %arg6[%c0_30, %c0_31], %49 {strides = array<i32>} : memref<1x128xf32, #tpu.memory_space<vmem>>, vector<1x128xf32>,
    return
  }
  func.func @transform_0(%arg0: i32) -> (i32, i32, i32) {
    %c0_i32 = arith.constant 0 : i32
    %c0_i32_0 = arith.constant 0 : i32
    %c0_i32_1 = arith.constant 0 : i32
    return %c0_i32, %c0_i32_0, %arg0 : i32, i32, i32
  }
  func.func @transform_1(%arg0: i32) -> (i32, i32) {
    %c0_i32 = arith.constant 0 : i32
    %c0_i32_0 = arith.constant 0 : i32
    return %c0_i32, %arg0 : i32, i32
  }
  func.func @transform_2(%arg0: i32) -> (i32, i32) {
    %c0_i32 = arith.constant 0 : i32
    %c0_i32_0 = arith.constant 0 : i32
    return %c0_i32, %arg0 : i32, i32
  }
  func.func @transform_3(%arg0: i32) -> (i32, i32, i32) {
    %c0_i32 = arith.constant 0 : i32
    %c0_i32_0 = arith.constant 0 : i32
    %c0_i32_1 = arith.constant 0 : i32
    return %c0_i32, %c0_i32_0, %arg0 : i32, i32, i32
  }
  func.func @transform_4(%arg0: i32) -> (i32, i32) {
    %c0_i32 = arith.constant 0 : i32
    %c0_i32_0 = arith.constant 0 : i32
    return %c0_i32, %arg0 : i32, i32
  }
  func.func @transform_5(%arg0: i32) -> (i32, i32) {
    %c0_i32 = arith.constant 0 : i32
    %c0_i32_0 = arith.constant 0 : i32
    return %c0_i32, %arg0 : i32, i32
  }
}

</mosaic_0001>

<bundles_post_ra>
// kernel: tpu_custom_call.1
= control target key start
LH: loop header
LB: loop body
LE: loop exit
PB: predicated region body
PF: predicated region fallthrough
CT: control target
= control target key end

     0   :  { %s1518_s0 = inlined_call_operand.hbm [shape: f32[8,32,256], index: 0, kind: input, shape index: {}]   ;;  %s1519_s1 = inlined_call_operand.hbm [shape: f32[1,256], index: 1, kind: input, shape index: {}]   ;;  %s1520_s2 = inlined_call_operand.hbm [shape: f32[1,256], index: 2, kind: input, shape index: {}]   ;;  %s1521_s3 = inlined_call_operand.hbm [shape: f32[6,32,256], index: 3, kind: input, shape index: {}]   ;;  %s1522_s4 = inlined_call_operand.hbm [shape: f32[6,256], index: 4, kind: input, shape index: {}]   ;;  %s1523_s5 = inlined_call_operand.hbm [shape: f32[1,256], index: 5, kind: output, shape index: {}]  }
   0x1   :  { %1533 = sst [smem:[#allocation22_spill]] %s1519_s1 }
   0x2   :  { %1534 = sst [smem:[#allocation23_spill]] %s1521_s3 }
   0x3   :  { %1535 = sst [smem:[#allocation24_spill]] %s1523_s5 }
   0x4   :  { %10 = vsyncpa [#allocation3], 0 }
   0x5   :  { %12 = vsyncpa [#allocation3 + $0x1], 0 }
   0x6   :  { %13 = vsyncpa [#allocation6], 0 }
   0x7   :  { %15 = vsyncpa [#allocation6 + $0x1], 0 }
   0x8   :  { %16 = vsyncpa [#allocation9], 0 }
   0x9   :  { %18 = vsyncpa [#allocation9 + $0x1], 0 }
   0xa   :  { %19 = vsyncpa [#allocation4], 0 }
   0xb   :  { %21 = vsyncpa [#allocation4 + $0x1], 0  ;;  %s1231_s18 = smov 0   ;;  %s1233_s19 = smov 0  }
   0xc   :  { %s1235_s20 = smov 0   ;;  %s1237_s21 = smov 0  }
   0xd LB: > { %1536 = sst [smem:[#allocation16_spill]] %s1184_s18  ;;  %s1252_s22 = sadd.s32 4294967295, %s1196_s21   ;;  %s1196_s21 = sphi %s1237_s21, %s1556_s21   ;;  %s1192_s20 = sphi %s1235_s20, %s1558_s20   ;;  %s1188_s19 = sphi %s1233_s19, %s1560_s19   ;;  %s1184_s18 = sphi %s1231_s18, %s1559_s18  }
   0xe   : > { %1537 = sst [smem:[#allocation17_spill]] %s1192_s20  ;;  %s834_s23 = sadd.s32 4294967294, %s1196_s21  }
   0xf   : > { %s1256_s24 = sadd.s32 1, %s1196_s21   ;;  %s34_s25 = sadd.s32 1, %s1192_s20 }
  0x10   : > { %1538 = sst [smem:[#allocation18_spill]] %s1256_s24  ;;  %s31_s26 = ssub.s32 %s1196_s21, %s1256_s24 }
  0x11   : > { %p41_p0 = scmp.ne.s32.totalorder %s1192_s20, %s1188_s19  ;;  %p32_p1 = scmp.eq.s32.totalorder %s31_s26, 0 }
  0x12   : > { %p42_p2 = scmp.eq.s32.totalorder %s1196_s21, 0  ;;  %p47_p3 = scmp.ne.s32.totalorder %s1188_s19, %s1184_s18 }
  0x13   : > { %p48_p4 = scmp.eq.s32.totalorder %s1252_s22, 0  ;;  %p175_p7 = scmp.eq.s32.totalorder %s1252_s22, 1 }
  0x14   : > { %s1268_s27 = scalar_select %p32_p1, %s1192_s20, %s34_s25  }
  0x15   : > { %p43_p5 = por %p42_p2, %p41_p0  ;;  %p1270_p6 = por %p48_p4, %p47_p3 }
  0x16   : > { %1539 = sst [smem:[#allocation19_spill]] %s1268_s27  ;;  %p181_p8 = scmp.eq.s32.totalorder %s834_s23, 1 }
  0x17   : > { %p836_p9 = scmp.ge.s32.totalorder %s1196_s21, 2  ;;  %p909_p10 = scmp.lt.s32.totalorder %s1196_s21, 2 }
  0x18   : > { %p1277_p11 = por %p175_p7, %p41_p0  ;;  %p1281_p12 = por %p181_p8, %p47_p3 }
  0x19   : > { %s1286_s6 = sand.u32 1, %s1192_s20   ;;  %p1288_p13 = pnand %p909_p10, %p43_p5 }
  0x1a   : > { %s1541_s29 = scalar_select %p1277_p11, 1, 0 }
  0x1b   : > { %s1543_s30 = scalar_select %p1281_p12, 1, 0 }
  0x1c   : > { %1542 = sst [smem:[#allocation20_spill]] %s1541_s29  ;;  %s1524_s8 = sand.u32 1, %s1196_s21  }
  0x1d   : > { %1544 = sst [smem:[#allocation21_spill]] %s1543_s30  ;;  %s225_s12 = scalar_lea.vmem [#allocation5], %s1286_s6 }
  0x1e   : > { %s1546_s1 = sld [smem:[#allocation22_spill]]  ;;  %s232_s13 = sshll.u32 %s225_s12, 4  ;;  %s233_s13 = int_to_ptr.vmem [resolvable:$true] %s232_s13 }
  0x1f   : > { %s1300_s15 = scalar_lea.sflag [#allocation6], %s1524_s8  ;;  %p1304_p1 = pneg %p1288_p13 }
  0x24   : > { %s228_s11 = scalar_lea.hbm %s1546_s1, %s1196_s21  ;;  %s979_s9 = scalar_lea.hbm %s1546_s1, 2 }
  0x25   : > { %s230_s14 = sshll.u32 %s228_s11, 4  ;;  %s231_s14 = int_to_ptr.hbm [resolvable:$true] %s230_s14 }
  0x26   : > { %s972_s16 = sshra.s32 %s231_s14, 4  ;;  %s973_s16 = int_to_ptr.hbm [resolvable:$true] %s972_s16 }
  0x27   : > { %s974_s17 = scalar_lea.hbm %s973_s16, 1  ;;  %p980_p4 = scmp.lt.s32.totalorder %s973_s16, %s1546_s1 }
  0x28   : > { %p975_p0 = scmp.ne.s32.totalorder %s973_s16, %s974_s17  ;;  %p981_p5 = scmp.lt.s32.totalorder %s979_s9, %s974_s17 }
  0x2a   : > { %p977_p2 = pnand %p1304_p1, %p975_p0  ;;  %p982_p7 = por %p981_p5, %p980_p4 }
  0x2c   : > { %p978_p3 = pneg %p977_p2 }
  0x2e   : > { %p983_p8 = pnand %p982_p7, %p978_p3 }
  0x30   : > { %986 = shalt.err (!%p983_p8)
}
  0x31   : > { %895 = dma.hbm_to_vmem [thread:$0]  (!%p1288_p13), %s231_s14, 16, %s233_s13, %s1300_s15  }
  0x32   : > { %p842_p10 = scmp.ge.s32.totalorder %s1196_s21, 1  ;;  %p294_p0 = scmp.lt.s32.totalorder %s1196_s21, 3 }
  0x33   : > { %s1322_s12 = sshll.u32 %s1196_s21, 3  ;;  %s875_s17 = smul.u32 192, %s1286_s6 }
  0x34   : > { %p1324_p2 = pnand %p842_p10, %p294_p0  ;;  %s1549_s3 = sld [smem:[#allocation23_spill]] }
  0x35   : > { %s260_s11 = scalar_lea.vmem [#allocation8], %s875_s17  ;;  %s837_s13 = sshll.u32 %s1286_s6, 8 }
  0x36   : > { %s267_s8 = sshll.u32 %s260_s11, 4  ;;  %s1550_s14 = sand.u32 1, %s1196_s21   ;;  %s268_s8 = int_to_ptr.vmem [resolvable:$true] %s267_s8 }
  0x37   : > { %s1336_s1 = scalar_lea.sflag [#allocation9], %s1550_s14 }
  0x3a   : > { %s264_s9 = scalar_lea.hbm %s1549_s3, %s1322_s12  ;;  %s1009_s25 = scalar_lea.hbm %s1549_s3, 384 }
  0x3b   : > { %s265_s10 = sshll.u32 %s264_s9, 4  ;;  %s266_s10 = int_to_ptr.hbm [resolvable:$true] %s265_s10 }
  0x3c   : > { %s1002_s27 = sshra.s32 %s266_s10, 4  ;;  %s1003_s27 = int_to_ptr.hbm [resolvable:$true] %s1002_s27 }
  0x3d   : > { %s1004_s20 = scalar_lea.hbm %s1003_s27, 192  ;;  %p1010_p7 = scmp.lt.s32.totalorder %s1003_s27, %s1549_s3 }
  0x3e   : > { %p1005_p3 = scmp.ne.s32.totalorder %s1003_s27, %s1004_s20  ;;  %p1011_p8 = scmp.lt.s32.totalorder %s1009_s25, %s1004_s20 }
  0x40   : > { %p1007_p4 = pnand %p1005_p3, %p1304_p1  ;;  %p1012_p10 = por %p1011_p8, %p1010_p7 }
  0x42   : > { %p1008_p5 = pneg %p1007_p4 }
  0x44   : > { %p1013_p0 = pnand %p1012_p10, %p1008_p5 }
  0x46   : > { %1016 = shalt.err (!%p1013_p0)
}
  0x47   : > { %s1198_s17 = smov 256   ;;  %s1199_s11 = smov 128  }
  0x48   : > { %s1200_s14 = smov 8   ;;  %s209_s18 = scalar_lea.hbm %s1518_s0, %s1322_s12 }
  0x49   : > { %901 = dma.hbm_to_vmem [thread:$0]  (!%p1288_p13), %s266_s10, 3072, %s268_s8, %s1336_s1, %s1198_s17, %s1199_s11, %s1200_s14  }
  0x4a   : > { %s210_s26 = sshll.u32 %s209_s18, 4  ;;  %s205_s27 = scalar_lea.vmem [#allocation2], %s837_s13  ;;  %s211_s26 = int_to_ptr.hbm [resolvable:$true] %s210_s26 }
  0x4b   : > { %s212_s20 = sshll.u32 %s205_s27, 4  ;;  %s202_s25 = scalar_lea.sflag [#allocation3], %s1286_s6  ;;  %s213_s20 = int_to_ptr.vmem [resolvable:$true] %s212_s20 }
  0x4c   : > { %s1032_s9 = sshra.s32 %s211_s26, 4  ;;  %s1039_s8 = scalar_lea.hbm %s1518_s0, 512  ;;  %s1033_s9 = int_to_ptr.hbm [resolvable:$true] %s1032_s9 }
  0x4d   : > { %s1034_s3 = scalar_lea.hbm %s1033_s9, 256  ;;  %p1040_p7 = scmp.lt.s32.totalorder %s1033_s9, %s1518_s0 }
  0x4e   : > { %p1035_p3 = scmp.ne.s32.totalorder %s1033_s9, %s1034_s3  ;;  %p1041_p8 = scmp.lt.s32.totalorder %s1039_s8, %s1034_s3 }
  0x50   : > { %p1037_p4 = pnand %p1035_p3, %p1304_p1  ;;  %p1042_p10 = por %p1041_p8, %p1040_p7 }
  0x52   : > { %p1038_p5 = pneg %p1037_p4 }
  0x54   : > { %p1043_p0 = pnand %p1042_p10, %p1038_p5 }
  0x56   : > { %1046 = shalt.err (!%p1043_p0)
}
  0x57   : > { %892 = dma.hbm_to_vmem [thread:$0]  (!%p1288_p13), %s211_s26, 4096, %s213_s20, %s202_s25, %s1198_s17, %s1199_s11, %s1200_s14  }
  0x58   : > { %s245_s30 = scalar_lea.hbm %s1520_s2, %s1196_s21  ;;  %s242_s29 = scalar_lea.vmem [#allocation7], %s1286_s6 }
  0x59   : > { %s247_s5 = sshll.u32 %s245_s30, 4  ;;  %s249_s27 = sshll.u32 %s242_s29, 4  ;;  %s248_s5 = int_to_ptr.hbm [resolvable:$true] %s247_s5  ;;  %s250_s27 = int_to_ptr.vmem [resolvable:$true] %s249_s27 }
  0x5a   : > { %s1062_s9 = sshra.s32 %s248_s5, 4  ;;  %s1069_s17 = scalar_lea.hbm %s1520_s2, 2  ;;  %s1063_s9 = int_to_ptr.hbm [resolvable:$true] %s1062_s9 }
  0x5b   : > { %s1064_s3 = scalar_lea.hbm %s1063_s9, 1  ;;  %p1070_p7 = scmp.lt.s32.totalorder %s1063_s9, %s1520_s2 }
  0x5c   : > { %p1065_p3 = scmp.ne.s32.totalorder %s1063_s9, %s1064_s3  ;;  %p1071_p8 = scmp.lt.s32.totalorder %s1069_s17, %s1064_s3 }
  0x5e   : > { %p1067_p4 = pnand %p1065_p3, %p1304_p1  ;;  %p1072_p10 = por %p1071_p8, %p1070_p7 }
  0x60   : > { %p1068_p5 = pneg %p1067_p4 }
  0x62   : > { %p1073_p0 = pnand %p1072_p10, %p1068_p5 }
  0x64   : > { %1076 = shalt.err (!%p1073_p0)
}
  0x65   : > { %898 = dma.hbm_to_vmem [thread:$0]  (!%p1288_p13), %s248_s5, 16, %s250_s27, %s1300_s15  }
  0x66   : > { %s840_s26 = sshll.u32 %s1286_s6, 3  ;;  %s285_s24 = scalar_lea.hbm %s1522_s4, %s1322_s12 }
  0x67   : > { %s287_s18 = sshll.u32 %s285_s24, 4  ;;  %s281_s13 = scalar_lea.vmem [#allocation10], %s840_s26  ;;  %s288_s18 = int_to_ptr.hbm [resolvable:$true] %s287_s18 }
  0x68   : > { %s289_s30 = sshll.u32 %s281_s13, 4  ;;  %s1092_s29 = sshra.s32 %s288_s18, 4  ;;  %s290_s30 = int_to_ptr.vmem [resolvable:$true] %s289_s30  ;;  %s1093_s29 = int_to_ptr.hbm [resolvable:$true] %s1092_s29 }
  0x69   : > { %s1094_s9 = scalar_lea.hbm %s1093_s29, 8  ;;  %s1099_s6 = scalar_lea.hbm %s1522_s4, 16 }
  0x6a   : > { %p1095_p3 = scmp.ne.s32.totalorder %s1093_s29, %s1094_s9  ;;  %p1100_p7 = scmp.lt.s32.totalorder %s1093_s29, %s1522_s4 }
  0x6b   : > { %p1101_p8 = scmp.lt.s32.totalorder %s1099_s6, %s1094_s9 }
  0x6c   : > { %p1097_p4 = pnand %p1095_p3, %p1304_p1 }
  0x6d   : > { %p1102_p10 = por %p1101_p8, %p1100_p7 }
  0x6e   : > { %p1098_p5 = pneg %p1097_p4 }
  0x70   : > { %p1103_p0 = pnand %p1102_p10, %p1098_p5 }
  0x72   : > { %1106 = shalt.err (!%p1103_p0)
}
  0x73   : > { %904 = dma.hbm_to_vmem [thread:$0]  (!%p1288_p13), %s288_s18, 128, %s290_s30, %s1336_s1  }
  0x74   : > { %298 = sbr.rel (%p1324_p2) target bundleno = 227 (0xe3), region = 40  ;;  %s1399_s23 = sand.u32 (!%p1324_p2), 1, %s1188_s19  }
  0x75   : > { %s843_s12 = sshll.u32 (!%p1324_p2), %s1399_s23, 8  ;;  %s301_s27 = scalar_lea.sflag (!%p1324_p2), [#allocation3], %s1399_s23 }
  0x76   : > { %s1403_s10 = scalar_lea.vmem (!%p1324_p2), [#allocation2], %s843_s12 }
  0x79   : > { %1167 = dma.done.wait (%p1270_p6), %s301_s27, 4096  }
  0x7a   : > { %1169 = vsyncadd (%p1270_p6), %s301_s27, 4294963200  ;;  %s310_s1 = sand.u32 1, %s1252_s22   ;;  %s313_s16 = scalar_lea.vmem [#allocation5], %s1399_s23 }
  0x7b   : > { %s311_s7 = scalar_lea.sflag [#allocation6], %s310_s1 }
  0x7c   : > { %1171 = dma.done.wait (%p1270_p6), %s311_s7, 32  }
  0x7d   : > { %1173 = vsyncadd (%p1270_p6), %s311_s7, 4294967264  ;;  %s876_s17 = smul.u32 192, %s1399_s23  ;;  %s322_s11 = scalar_lea.vmem [#allocation7], %s1399_s23 }
  0x7e   : > { %s329_s14 = scalar_lea.sflag [#allocation9], %s310_s1 }
  0x7f   : > { %s1417_s26 = scalar_lea.vmem [#allocation8], %s876_s17 }
  0x80   : > { %1175 = dma.done.wait (%p1270_p6), %s329_s14, 3200  }
  0x81   : > { %1177 = vsyncadd (%p1270_p6), %s329_s14, 4294964096  ;;  %v387_v0 = vld [vmem:[%s1403_s10] sm:$0xff]  ;;  %v388_v1 = vld [vmem:[%s1403_s10 + $0x8] sm:$0xff]  ;;  %s844_s28 = sshll.u32 %s1399_s23, 3  ;;  %vm651_vm0 = vcmask 1041409   ;;  %vm654_vm1 = vcmask 1042434  }
  0x82   : > { %v389_v2 = vld [vmem:[%s1403_s10 + $0x10] sm:$0xff]  ;;  %v390_v3 = vld [vmem:[%s1403_s10 + $0x18] sm:$0xff]  ;;  %v845_v4 = vld [vmem:[%s1403_s10 + $0x20] sm:$0xff]  ;;  %s342_s20 = scalar_lea.vmem [#allocation10], %s844_s28  ;;  %vm657_vm2 = vcmask 1043459   ;;  %vm660_vm3 = vcmask 1044484  }
  0x83   : > { %v846_v5 = vld [vmem:[%s1403_s10 + $0x28] sm:$0xff]  ;;  %v847_v6 = vld [vmem:[%s1403_s10 + $0x30] sm:$0xff]  ;;  %v848_v7 = vld [vmem:[%s1403_s10 + $0x38] sm:$0xff]  ;;  %v396_v8 = vadd.f32 %v845_v4, %v387_v0  ;;  %vm663_vm4 = vcmask 1045509   ;;  %vm666_vm5 = vcmask 1045504   ;;  %s1551_s18 = sld [smem:[#allocation24_spill]] }
  0x84   : > { %v397_v9 = vadd.f32 %v846_v5, %v388_v1  ;;  %v849_v10 = vld [vmem:[%s1403_s10 + $0x40] sm:$0xff]  ;;  %v398_v11 = vadd.f32 %v847_v6, %v389_v2  ;;  %v399_v12 = vadd.f32 %v848_v7, %v390_v3  ;;  %v850_v13 = vld [vmem:[%s1403_s10 + $0x48] sm:$0xff]  ;;  %v851_v14 = vld [vmem:[%s1403_s10 + $0x50] sm:$0xff]  ;;  %s386_s9 = scalar_lea.vmem [#allocation11], %s1399_s23  ;;  %s678_s6 = scalar_lea.sflag [#allocation4], %s1399_s23 }
  0x85   : > { %v852_v15 = vld [vmem:[%s1403_s10 + $0x58] sm:$0xff]  ;;  %v405_v16 = vadd.f32 %v849_v10, %v396_v8  ;;  %v853_v18 = vld [vmem:[%s1403_s10 + $0x60] sm:$0xff]  ;;  %v854_v19 = vld [vmem:[%s1403_s10 + $0x68] sm:$0xff]  ;;  %s688_s3 = sshll.u32 %s386_s9, 4  ;;  %s689_s3 = int_to_ptr.vmem [resolvable:$true] %s688_s3 }
  0x86   : > { %v406_v17 = vadd.f32 %v850_v13, %v397_v9  ;;  %v855_v20 = vld [vmem:[%s1403_s10 + $0x70] sm:$0xff]  ;;  %v407_v21 = vadd.f32 %v851_v14, %v398_v11  ;;  %v408_v22 = vadd.f32 %v852_v15, %v399_v12  ;;  %v856_v23 = vld [vmem:[%s1403_s10 + $0x78] sm:$0xff]  ;;  %v857_v24 = vld [vmem:[%s1403_s10 + $0x80] sm:$0xff] }
  0x87   : > { %v858_v25 = vld [vmem:[%s1403_s10 + $0x88] sm:$0xff]  ;;  %v414_v26 = vadd.f32 %v853_v18, %v405_v16  ;;  %v859_v28 = vld [vmem:[%s1403_s10 + $0x90] sm:$0xff]  ;;  %v860_v29 = vld [vmem:[%s1403_s10 + $0x98] sm:$0xff] }
  0x88   : > { %v415_v27 = vadd.f32 %v854_v19, %v406_v17  ;;  %v416_v30 = vadd.f32 %v855_v20, %v407_v21  ;;  %v417_v31 = vadd.f32 %v856_v23, %v408_v22  ;;  %v861_v32 = vld [vmem:[%s1403_s10 + $0xa0] sm:$0xff]  ;;  %v862_v33 = vld [vmem:[%s1403_s10 + $0xa8] sm:$0xff]  ;;  %v863_v36 = vld [vmem:[%s1403_s10 + $0xb0] sm:$0xff] }
  0x89   : > { %v423_v34 = vadd.f32 %v857_v24, %v414_v26  ;;  %v864_v37 = vld [vmem:[%s1403_s10 + $0xb8] sm:$0xff]  ;;  %v865_v40 = vld [vmem:[%s1403_s10 + $0xc0] sm:$0xff]  ;;  %v866_v41 = vld [vmem:[%s1403_s10 + $0xc8] sm:$0xff]  ;;  %s1552_s13 = smov %s1551_s18  ;;  %s686_s30 = scalar_lea.hbm %s1551_s18, %s1252_s22 }
  0x8a   : > { %v424_v35 = vadd.f32 %v858_v25, %v415_v27  ;;  %v425_v38 = vadd.f32 %v859_v28, %v416_v30  ;;  %v426_v39 = vadd.f32 %v860_v29, %v417_v31  ;;  %v867_v44 = vld [vmem:[%s1403_s10 + $0xd0] sm:$0xff]  ;;  %v868_v45 = vld [vmem:[%s1403_s10 + $0xd8] sm:$0xff]  ;;  %v454_v46 = vld [vmem:[%s313_s16] sm:$0x1]  ;;  %s690_s8 = sshll.u32 %s686_s30, 4  ;;  %s1142_s27 = scalar_lea.hbm %s1552_s13, 2  ;;  %s691_s8 = int_to_ptr.hbm [resolvable:$true] %s690_s8 }
  0x8b   : > { %v432_v42 = vadd.f32 %v861_v32, %v423_v34  ;;  %946 = vrcp.f32 %v454_v46  ;;  %v869_v51 = vld [vmem:[%s1403_s10 + $0xe0] sm:$0xff]  ;;  %v870_v54 = vld [vmem:[%s1403_s10 + $0xe8] sm:$0xff]  ;;  %v871_v55 = vld [vmem:[%s1403_s10 + $0xf0] sm:$0xff]  ;;  %s1136_s15 = sshra.s32 %s691_s8, 4  ;;  %s1137_s15 = int_to_ptr.hbm [resolvable:$true] %s1136_s15 }
  0x8c   : > { %v433_v43 = vadd.f32 %v862_v33, %v424_v35  ;;  %v434_v47 = vadd.f32 %v863_v36, %v425_v38  ;;  %v435_v48 = vadd.f32 %v864_v37, %v426_v39  ;;  %v872_v56 = vld [vmem:[%s1403_s10 + $0xf8] sm:$0xff]  ;;  %v463_v62 = vld [vmem:[%s1417_s26] sm:$0xff]  ;;  %v464_v0 = vld [vmem:[%s1417_s26 + $0x8] sm:$0xff]  ;;  %s1138_s5 = scalar_lea.hbm %s1137_s15, 1  ;;  %p1143_p2 = scmp.lt.s32.totalorder %s1137_s15, %s1552_s13 }
  0x8d   : > { %v441_v49 = vadd.f32 %v865_v40, %v432_v42  ;;  %v465_v1 = vld [vmem:[%s1417_s26 + $0x10] sm:$0xff]  ;;  %v466_v2 = vld [vmem:[%s1417_s26 + $0x18] sm:$0xff]  ;;  %v467_v3 = vld [vmem:[%s1417_s26 + $0x20] sm:$0xff]  ;;  %p1139_p6 = scmp.ne.s32.totalorder %s1137_s15, %s1138_s5  ;;  %p1144_p3 = scmp.lt.s32.totalorder %s1142_s27, %s1138_s5 }
  0x8e   : > { %v442_v50 = vadd.f32 %v866_v41, %v433_v43  ;;  %v443_v52 = vadd.f32 %v867_v44, %v434_v47  ;;  %v444_v53 = vadd.f32 %v868_v45, %v435_v48  ;;  %v468_v4 = vld [vmem:[%s1417_s26 + $0x28] sm:$0xff]  ;;  %v469_v5 = vld [vmem:[%s1417_s26 + $0x30] sm:$0xff]  ;;  %v470_v10 = vld [vmem:[%s1417_s26 + $0x38] sm:$0xff] }
  0x8f   : > { %v450_v57 = vadd.f32 %v869_v51, %v441_v49  ;;  %v471_v11 = vld [vmem:[%s1417_s26 + $0x40] sm:$0xff]  ;;  %v472_v12 = vld [vmem:[%s1417_s26 + $0x48] sm:$0xff]  ;;  %v473_v13 = vld [vmem:[%s1417_s26 + $0x50] sm:$0xff]  ;;  %p1140_p13 = pnand %p1139_p6, %p1277_p11  ;;  %p1145_p4 = por %p1144_p3, %p1143_p2 }
  0x90   : > { %v451_v58 = vadd.f32 %v870_v54, %v442_v50  ;;  %v452_v59 = vadd.f32 %v871_v55, %v443_v52  ;;  %v453_v60 = vadd.f32 %v872_v56, %v444_v53  ;;  %v474_v14 = vld [vmem:[%s1417_s26 + $0x58] sm:$0xff]  ;;  %v475_v15 = vld [vmem:[%s1417_s26 + $0x60] sm:$0xff]  ;;  %v476_v16 = vld [vmem:[%s1417_s26 + $0x68] sm:$0xff] }
  0x91   : > { %v947_v61 = vpop.eup %946  ;;  %v477_v17 = vld [vmem:[%s1417_s26 + $0x70] sm:$0xff]  ;;  %v478_v18 = vld [vmem:[%s1417_s26 + $0x78] sm:$0xff]  ;;  %v479_v21 = vld [vmem:[%s1417_s26 + $0x80] sm:$0xff]  ;;  %p1141_p1 = pneg %p1140_p13 }
  0x92   : > { %v457_v63 = vperm.slane %v947_v61, 0  ;;  %v480_v22 = vld [vmem:[%s1417_s26 + $0x88] sm:$0xff]  ;;  %v481_v23 = vld [vmem:[%s1417_s26 + $0x90] sm:$0xff]  ;;  %v483_v28 = vld [vmem:[%s1417_s26 + $0xa0] sm:$0xff] }
  0x93   : > { %v484_v29 = vld [vmem:[%s1417_s26 + $0xa8] sm:$0xff]  ;;  %v485_v30 = vld [vmem:[%s1417_s26 + $0xb0] sm:$0xff]  ;;  %v482_v39 = vld [vmem:[%s1417_s26 + $0x98] sm:$0xff]  ;;  %p1146_p5 = pnand %p1145_p4, %p1141_p1 }
  0x94   : > { %v459_v6 = vmul.f32 %v457_v63, %v450_v57  ;;  %v460_v7 = vmul.f32 %v457_v63, %v451_v58  ;;  %v461_v8 = vmul.f32 %v457_v63, %v452_v59  ;;  %v462_v9 = vmul.f32 %v457_v63, %v453_v60  ;;  %v486_v40 = vld [vmem:[%s1417_s26 + $0xb8] sm:$0xff] }
  0x96   : > { %v487_v19 = vmul.f32 %v463_v62, %v459_v6  ;;  %v488_v20 = vmul.f32 %v464_v0, %v460_v7  ;;  %v489_v24 = vmul.f32 %v465_v1, %v461_v8  ;;  %v490_v25 = vmul.f32 %v466_v2, %v462_v9 }
  0x97   : > { %v491_v26 = vmul.f32 %v467_v3, %v459_v6  ;;  %v492_v27 = vmul.f32 %v468_v4, %v460_v7  ;;  %v493_v31 = vmul.f32 %v469_v5, %v461_v8  ;;  %v494_v32 = vmul.f32 %v470_v10, %v462_v9 }
  0x98   : > { %v495_v33 = vmul.f32 %v471_v11, %v459_v6  ;;  %v496_v34 = vmul.f32 %v472_v12, %v460_v7  ;;  %v497_v35 = vmul.f32 %v473_v13, %v461_v8  ;;  %v498_v36 = vmul.f32 %v474_v14, %v462_v9 }
  0x99   : > { %v499_v37 = vmul.f32 %v475_v15, %v459_v6  ;;  %v500_v38 = vmul.f32 %v476_v16, %v460_v7  ;;  %v501_v41 = vmul.f32 %v477_v17, %v461_v8  ;;  %v502_v42 = vmul.f32 %v478_v18, %v462_v9  ;;  %v565_v15 = vld [vmem:[%s342_s20] sm:$0x3f] }
  0x9a   : > { %v503_v43 = vmul.f32 %v479_v21, %v459_v6  ;;  %v504_v44 = vmul.f32 %v480_v22, %v460_v7  ;;  %v505_v45 = vmul.f32 %v481_v23, %v461_v8  ;;  %v507_v46 = vmul.f32 %v483_v28, %v459_v6 }
  0x9b   : > { %v508_v47 = vmul.f32 %v484_v29, %v460_v7  ;;  %v509_v48 = vmul.f32 %v485_v30, %v461_v8  ;;  %v511_v49 = vadd.f32 %v488_v20, %v487_v19  ;;  %v520_v50 = vadd.f32 %v492_v27, %v491_v26 }
  0x9c   : > { %v529_v51 = vadd.f32 %v496_v34, %v495_v33  ;;  %v538_v52 = vadd.f32 %v500_v38, %v499_v37  ;;  %v506_v53 = vmul.f32 %v482_v39, %v462_v9  ;;  %v510_v54 = vmul.f32 %v486_v40, %v462_v9 }
  0x9d   : > { %v547_v55 = vadd.f32 %v504_v44, %v503_v43  ;;  %v556_v56 = vadd.f32 %v508_v47, %v507_v46  ;;  %v512_v57 = vadd.f32 %v511_v49, %v489_v24  ;;  %v521_v58 = vadd.f32 %v520_v50, %v493_v31 }
  0x9e   : > { %v530_v59 = vadd.f32 %v529_v51, %v497_v35  ;;  %v539_v60 = vadd.f32 %v538_v52, %v501_v41  ;;  %v567_v24 = vrot.slane %v565_v15, 1  ;;  %v568_v31 = vrot.slane %v565_v15, 2 }
  0x9f   : > { %v548_v61 = vadd.f32 %v547_v55, %v505_v45  ;;  %v557_v62 = vadd.f32 %v556_v56, %v509_v48  ;;  %v513_v63 = vadd.f32 %v512_v57, %v490_v25  ;;  %v522_v0 = vadd.f32 %v521_v58, %v494_v32 }
  0xa0   : > { %v531_v1 = vadd.f32 %v530_v59, %v498_v36  ;;  %v540_v2 = vadd.f32 %v539_v60, %v502_v42  ;;  %v569_v32 = vrot.slane %v565_v15, 3  ;;  %v570_v39 = vrot.slane %v565_v15, 4 }
  0xa1   : > { %v549_v3 = vadd.f32 %v548_v61, %v506_v53  ;;  %v558_v4 = vadd.f32 %v557_v62, %v510_v54  ;;  %v514_v5 = vrot.slane %v513_v63, 4  ;;  %v523_v6 = vrot.slane %v522_v0, 4 }
  0xa2   : > { %v532_v7 = vrot.slane %v531_v1, 4  ;;  %v541_v8 = vrot.slane %v540_v2, 4  ;;  %v571_v40 = vrot.slane %v565_v15, 5 }
  0xa3   : > { %v550_v9 = vrot.slane %v549_v3, 4  ;;  %v559_v10 = vrot.slane %v558_v4, 4  ;;  %v515_v11 = vadd.f32 %v514_v5, %v513_v63  ;;  %v524_v12 = vadd.f32 %v523_v6, %v522_v0 }
  0xa4   : > { %v533_v13 = vadd.f32 %v532_v7, %v531_v1  ;;  %v542_v14 = vadd.f32 %v541_v8, %v540_v2 }
  0xa5   : > { %v551_v16 = vadd.f32 %v550_v9, %v549_v3  ;;  %v560_v17 = vadd.f32 %v559_v10, %v558_v4  ;;  %v516_v18 = vrot.slane %v515_v11, 2  ;;  %v525_v19 = vrot.slane %v524_v12, 2 }
  0xa6   : > { %v534_v20 = vrot.slane %v533_v13, 2  ;;  %v543_v21 = vrot.slane %v542_v14, 2 }
  0xa7   : > { %v552_v22 = vrot.slane %v551_v16, 2  ;;  %v561_v23 = vrot.slane %v560_v17, 2  ;;  %v517_v25 = vadd.f32 %v516_v18, %v515_v11  ;;  %v526_v26 = vadd.f32 %v525_v19, %v524_v12 }
  0xa8   : > { %v535_v27 = vadd.f32 %v534_v20, %v533_v13  ;;  %v544_v28 = vadd.f32 %v543_v21, %v542_v14 }
  0xa9   : > { %v553_v29 = vadd.f32 %v552_v22, %v551_v16  ;;  %v562_v30 = vadd.f32 %v561_v23, %v560_v17  ;;  %v518_v33 = vrot.slane %v517_v25, 1  ;;  %v527_v34 = vrot.slane %v526_v26, 1 }
  0xaa   : > { %v536_v35 = vrot.slane %v535_v27, 1  ;;  %v545_v36 = vrot.slane %v544_v28, 1 }
  0xab   : > { %v554_v37 = vrot.slane %v553_v29, 1  ;;  %v563_v38 = vrot.slane %v562_v30, 1  ;;  %v519_v41 = vadd.f32 %v518_v33, %v517_v25  ;;  %v528_v42 = vadd.f32 %v527_v34, %v526_v26 }
  0xac   : > { %v537_v43 = vadd.f32 %v536_v35, %v535_v27  ;;  %v546_v44 = vadd.f32 %v545_v36, %v544_v28 }
  0xad   : > { %v555_v45 = vadd.f32 %v554_v37, %v553_v29  ;;  %v564_v46 = vadd.f32 %v563_v38, %v562_v30  ;;  %v578_v47 = vmul.f32 %v565_v15, %v519_v41  ;;  %v579_v48 = vmul.f32 %v567_v24, %v528_v42 }
  0xae   : > { %v580_v49 = vmul.f32 %v568_v31, %v537_v43  ;;  %v581_v50 = vmul.f32 %v569_v32, %v546_v44 }
  0xaf   : > { %v582_v51 = vmul.f32 %v570_v39, %v555_v45  ;;  %v583_v52 = vmul.f32 %v571_v40, %v564_v46  ;;  %v596_v53 = vand.u32 2147483647, %v578_v47  ;;  %v597_v54 = vand.u32 2147483647, %v579_v48 }
  0xb0   : > { %v598_v55 = vand.u32 2147483647, %v580_v49  ;;  %v599_v56 = vand.u32 2147483647, %v581_v50  ;;  %v584_v17 = vsub.f32 0.0, %v578_v47  ;;  %v585_v18 = vsub.f32 0.0, %v579_v48 }
  0xb1   : > { %v600_v57 = vand.u32 2147483647, %v582_v51  ;;  %v601_v58 = vand.u32 2147483647, %v583_v52  ;;  %v602_v59 = vsub.f32 0.0, %v596_v53  ;;  %v603_v60 = vsub.f32 0.0, %v597_v54 }
  0xb2   : > { %v604_v61 = vsub.f32 0.0, %v598_v55  ;;  %v605_v62 = vsub.f32 0.0, %v599_v56  ;;  %v586_v20 = vsub.f32 0.0, %v580_v49  ;;  %v587_v22 = vsub.f32 0.0, %v581_v50 }
  0xb3   : > { %v606_v63 = vsub.f32 0.0, %v600_v57  ;;  %v607_v0 = vsub.f32 0.0, %v601_v58  ;;  %v608_v1 = vmul.f32 1.442695, %v602_v59  ;;  %v610_v2 = vmul.f32 1.442695, %v603_v60 }
  0xb4   : > { %v612_v3 = vmul.f32 1.442695, %v604_v61  ;;  %v614_v4 = vmul.f32 1.442695, %v605_v62  ;;  %v588_v23 = vsub.f32 0.0, %v582_v51  ;;  %v589_v25 = vsub.f32 0.0, %v583_v52 }
  0xb5   : > { %948 = vpow2.f32 %v608_v1  ;;  %v616_v5 = vmul.f32 1.442695, %v606_v63  ;;  %v618_v6 = vmul.f32 1.442695, %v607_v0  ;;  %v590_v26 = vmax.f32 %v584_v17, 0.0 }
  0xb6   : > { %950 = vpow2.f32 %v610_v2  ;;  %v591_v27 = vmax.f32 %v585_v18, 0.0  ;;  %v592_v29 = vmax.f32 %v586_v20, 0.0  ;;  %v593_v32 = vmax.f32 %v587_v22, 0.0  ;;  %v674_v1 = vld [vmem:[%s322_s11] sm:$0x1] }
  0xb7   : > { %952 = vpow2.f32 %v612_v3  ;;  %v594_v35 = vmax.f32 %v588_v23, 0.0  ;;  %v595_v38 = vmax.f32 %v589_v25, 0.0 }
  0xb8   : > { %954 = vpow2.f32 %v614_v4 }
  0xb9   : > { %956 = vpow2.f32 %v616_v5 }
  0xba   : > { %958 = vpow2.f32 %v618_v6 }
  0xbb   : > { %v949_v7 = vpop.eup %948 }
  0xbc   : > { %v951_v8 = vpop.eup %950  ;;  %v620_v9 = vadd.f32 1.0, %v949_v7 }
  0xbd   : > { %v953_v10 = vpop.eup %952  ;;  %v621_v11 = vadd.f32 1.0, %v951_v8 }
  0xbe   : > { %v955_v12 = vpop.eup %954  ;;  %v622_v13 = vadd.f32 1.0, %v953_v10  ;;  %960 = vlog2.f32 %v620_v9 }
  0xbf   : > { %v957_v14 = vpop.eup %956  ;;  %v623_v15 = vadd.f32 1.0, %v955_v12  ;;  %962 = vlog2.f32 %v621_v11 }
  0xc0   : > { %v959_v16 = vpop.eup %958  ;;  %v624_v19 = vadd.f32 1.0, %v957_v14  ;;  %964 = vlog2.f32 %v622_v13 }
  0xc1   : > { %v625_v21 = vadd.f32 1.0, %v959_v16  ;;  %966 = vlog2.f32 %v623_v15 }
  0xc2   : > { %968 = vlog2.f32 %v624_v19 }
  0xc3   : > { %970 = vlog2.f32 %v625_v21 }
  0xc4   : > { %v961_v24 = vpop.eup %960 }
  0xc5   : > { %v963_v28 = vpop.eup %962  ;;  %v627_v30 = vmul.f32 0.6931472, %v961_v24 }
  0xc6   : > { %v965_v31 = vpop.eup %964  ;;  %v629_v33 = vmul.f32 0.6931472, %v963_v28 }
  0xc7   : > { %v967_v34 = vpop.eup %966  ;;  %v631_v36 = vmul.f32 0.6931472, %v965_v31  ;;  %v638_v40 = vadd.f32 %v627_v30, %v590_v26 }
  0xc8   : > { %v969_v37 = vpop.eup %968  ;;  %v633_v39 = vmul.f32 0.6931472, %v967_v34  ;;  %v639_v41 = vadd.f32 %v629_v33, %v591_v27 }
  0xc9   : > { %v971_v42 = vpop.eup %970  ;;  %v635_v43 = vmul.f32 0.6931472, %v969_v37  ;;  %v640_v44 = vadd.f32 %v631_v36, %v592_v29 }
  0xca   : > { %v637_v45 = vmul.f32 0.6931472, %v971_v42  ;;  %v641_v46 = vadd.f32 %v633_v39, %v593_v32  ;;  %v650_v47 = vrot.slane %v639_v41, 7 }
  0xcb   : > { %v642_v48 = vadd.f32 %v635_v43, %v594_v35  ;;  %v653_v49 = vrot.slane %v640_v44, 6 }
  0xcc   : > { %v643_v50 = vadd.f32 %v637_v45, %v595_v38  ;;  %v652_v51 = vsel %vm651_vm0, %v650_v47, %v638_v40  ;;  %v656_v52 = vrot.slane %v641_v46, 5 }
  0xcd   : > { %v655_v53 = vsel %vm654_vm1, %v653_v49, %v652_v51  ;;  %v659_v54 = vrot.slane %v642_v48, 4 }
  0xce   : > { %v658_v55 = vsel %vm657_vm2, %v656_v52, %v655_v53  ;;  %v662_v56 = vrot.slane %v643_v50, 3 }
  0xcf   : > { %v661_v57 = vsel %vm660_vm3, %v659_v54, %v658_v55 }
  0xd0   : > { %v664_v58 = vsel %vm663_vm4, %v662_v56, %v661_v57 }
  0xd1   : > { %v667_v59 = vsel %vm666_vm5, %v664_v58, 0.0 }
  0xd2   : > { %v668_v60 = vrot.slane %v667_v59, 4 }
  0xd4   : > { %v669_v61 = vadd.f32 %v668_v60, %v667_v59 }
  0xd6   : > { %v670_v62 = vrot.slane %v669_v61, 2 }
  0xd8   : > { %v671_v63 = vadd.f32 %v670_v62, %v669_v61 }
  0xda   : > { %v672_v0 = vrot.slane %v671_v63, 1 }
  0xdc   : > { %v673_v2 = vadd.f32 %v672_v0, %v671_v63 }
  0xde   : > { %v675_v3 = vmul.f32 %v674_v1, %v673_v2 }
  0xe0   : > { %676 = vst [vmem:[%s386_s9] sm:$0x1] %v675_v3 }
  0xe1   : > { %1149 = shalt.err (!%p1146_p5)
}
  0xe2   : > { %887 = dma.vmem_to_hbm [thread:$0]  (%p1277_p11), %s689_s3, 16, %s691_s8, %s678_s6  }
  0xe3 PF: > { %s1554_s23 = sld [smem:[#allocation16_spill]]  ;;  %p906_p7 = pnand %p836_p9, %p1281_p12 }
  0xe5   : > { %p907_p8 = pneg %p906_p7 }
  0xe9   : > { %s702_s16 = sand.u32 1, %s1554_s23  }
  0xea   : > { %s703_s17 = scalar_lea.sflag [#allocation4], %s702_s16 }
  0xeb   : > { %1179 = dma.done.wait (%p907_p8), %s703_s17, 16  }
  0xec   : > { %1181 = vsyncadd (%p907_p8), %s703_s17, 4294967280  ;;  %s1556_s21 = sld [smem:[#allocation18_spill]]  ;;  %s1559_s18 = smov %s1188_s19 }
  0xed   : > { %s1557_s11 = sld [smem:[#allocation17_spill]] }
  0xee   : > { %s1558_s20 = sld [smem:[#allocation19_spill]] }
  0xf2   : > { %p24_p10 = scmp.ge.s32.totalorder %s1556_s21, 4  }
  0xf3   : > { %s1560_s19 = smov %s1557_s11 }
  0xf4   :  { %26 = sbr.rel (!%p24_p10) target bundleno = 13 (0xd), region = 140 }
  0xf9   :  { %708 = vsyncpa [#allocation3], 1 }
  0xfa   :  { %710 = vsyncpa [#allocation3 + $0x1], 1 }
  0xfb   :  { %711 = vsyncpa [#allocation6], 1 }
  0xfc   :  { %713 = vsyncpa [#allocation6 + $0x1], 1 }
  0xfd   :  { %714 = vsyncpa [#allocation9], 1 }
  0xfe   :  { %716 = vsyncpa [#allocation9 + $0x1], 1 }
  0xff   :  { %717 = vsyncpa [#allocation4], 1 }
 0x100   :  { %719 = vsyncpa [#allocation4 + $0x1], 1 }

</bundles_post_ra>
